<compile_context>
chip_gen: v7x
topology: tpu7x:2x2x1
jax: 0.10.0
libtpu: 0.0.40
codegen_flags: <defaults>
</compile_context>

<pallas_src>
import functools

import jax
import jax.numpy as jnp
from jax.experimental import pallas as pl
from jax.experimental.pallas import tpu as pltpu


# ---------------------------------------------------------------------------
# Kernel body (shared by every path; shapes differ per BlockSpec).
# ---------------------------------------------------------------------------
def qnet_kernel(x_ref, w1_ref, b1_ref, w2_ref, b2_ref, o_ref):
    # Cast LHS to the weight dtype in-register (cheap VPU op) so bf16 weights
    # give a bf16 MXU matmul without any wrapper-side obs recast.
    x = x_ref[...].astype(w1_ref.dtype)
    h = jnp.dot(x, w1_ref[...], preferred_element_type=jnp.float32)
    # Bias + ReLU epilogue kept in f32 (exact vs. PyTorch).
    h = jnp.maximum(h + b1_ref[...], 0.0)
    y = jnp.dot(h.astype(w2_ref.dtype), w2_ref[...],
                preferred_element_type=jnp.float32)
    o_ref[...] = (y + b2_ref[...]).astype(o_ref.dtype)


# ---------------------------------------------------------------------------
# Static helpers (all operate on Python ints at trace time).
# ---------------------------------------------------------------------------
def _cdiv(a, b):
    return -(-a // b)


def _round_up(x, m):
    return ((x + m - 1) // m) * m


def _choose_tile(rows, max_tile, align):
    """Pick a row tile <= max_tile, preferring an even tile count so the
    'parallel' batch axis splits evenly across v7x's two TensorCores."""
    max_tile = max(align, (max_tile // align) * align)
    nt = _cdiv(rows, max_tile)
    if nt > 1 and nt % 2 == 1:
        nt += 1
    tb = min(_round_up(_cdiv(rows, nt), align), max_tile)
    nt = _cdiv(rows, tb)
    return tb, nt


def _maybe_vmem_limit(tb, in_lanes, out_lanes, in_itemsize):
    """Return an explicit vmem_limit_bytes only if the double-buffered
    footprint exceeds the scoped default; otherwise None."""
    lane = lambda n: _round_up(n, 128)
    est = 2 * tb * lane(in_lanes) * in_itemsize      # double-buffered obs
    est += 2 * tb * lane(out_lanes) * 4              # double-buffered out (f32)
    est += tb * lane(max(in_lanes, out_lanes)) * 4   # hidden / epilogue slack
    est += 2 << 20                                   # resident weights + misc
    if est <= (28 << 20):
        return None
    # TODO(synk): v7x only has 64 MiB physical VMEM (vs 128 MiB on v5e/v6e);
    # re-derive the maximum batch_tile per generation instead of just raising
    # the limit.
    return min(_round_up(int(est * 1.25), 1 << 20), 64 << 20)


def _qnet_pallas_grid(x, w1, b1, w2, b2, tb, nt, vmem_limit_bytes):
    """1-D grid over (possibly folded) batch rows; weights/biases resident via
    constant index_maps; obs/out tiles double-buffered by BlockSpec."""
    rows, in_f = x.shape
    hidden = w1.shape[1]
    out_f = w2.shape[1]
    cp_kwargs = dict(dimension_semantics=("parallel",))
    if vmem_limit_bytes is not None:
        cp_kwargs["vmem_limit_bytes"] = vmem_limit_bytes
    return pl.pallas_call(
        qnet_kernel,
        out_shape=jax.ShapeDtypeStruct((rows, out_f), jnp.float32),
        grid_spec=pltpu.PrefetchScalarGridSpec(
            num_scalar_prefetch=0,
            grid=(nt,),
            in_specs=[
                # obs: streamed per batch tile (double-buffered by BlockSpec).
                # If a trace ever shows exposed obs DMA at the chosen tile,
                # add pipeline_mode=pl.Buffered(3) here (prefer bigger TB 1st).
                pl.BlockSpec((tb, in_f), lambda i: (i, 0)),
                # Weights/biases: constant index_map -> DMA'd once, resident.
                pl.BlockSpec((in_f, hidden), lambda i: (0, 0)),
                pl.BlockSpec((1, hidden), lambda i: (0, 0)),
                pl.BlockSpec((hidden, out_f), lambda i: (0, 0)),
                pl.BlockSpec((1, out_f), lambda i: (0, 0)),
            ],
            out_specs=pl.BlockSpec((tb, out_f), lambda i: (i, 0)),
        ),
        compiler_params=pltpu.CompilerParams(**cp_kwargs),
    )(x, w1, b1, w2, b2)


# ---------------------------------------------------------------------------
# Public forward pass.
# ---------------------------------------------------------------------------
@functools.partial(jax.jit, static_argnames=("batch_tile", "fold", "use_bf16"))
def qnet_forward(obs, w1, b1, w2, b2, *, batch_tile=8192, fold=8,
                 use_bf16=False):
    """obs: (B, input_size); w1: (input_size, hidden); b1: (1, hidden);
    w2: (hidden, output_size); b2: (1, output_size). Returns f32 (B, out)."""
    B, in_size = obs.shape
    hidden = w1.shape[1]
    out_size = w2.shape[1]

    if use_bf16:
        # Only the tiny weights are recast; obs is streamed in whatever dtype
        # the caller provides (recasting it here would add a full extra HBM
        # pass over obs that costs more than the kernel itself).
        w1 = w1.astype(jnp.bfloat16)
        w2 = w2.astype(jnp.bfloat16)

    # ---- Small/medium batch: one block, everything resident, no grid. ----
    if B <= batch_tile:
        vmem = pl.BlockSpec(memory_space=pltpu.MemorySpace.VMEM)
        return pl.pallas_call(
            qnet_kernel,
            out_shape=jax.ShapeDtypeStruct((B, out_size), jnp.float32),
            in_specs=[vmem] * 5,
            out_specs=vmem,
        )(obs, w1, b1, w2, b2)

    align = 16  # sublane multiple valid for both f32 (8) and bf16 (16) tiles

    # ---- Lane-dense folded gridded path (fold rows packed into lanes). ----
    if fold > 1 and B % fold == 0:
        # Block-diagonal weights: kron(I_fold, W).  Exact (multiply by 0/1).
        w1f = jnp.kron(jnp.eye(fold, dtype=w1.dtype), w1)
        w2f = jnp.kron(jnp.eye(fold, dtype=w2.dtype), w2)
        b1f = jnp.tile(b1, (1, fold))
        b2f = jnp.tile(b2, (1, fold))
        obs_f = obs.reshape(B // fold, fold * in_size)   # contiguous -> ~free
        rows = B // fold
        tb, nt = _choose_tile(rows, batch_tile // fold, align)
        vmem_limit = _maybe_vmem_limit(tb, fold * in_size, fold * out_size,
                                       obs.dtype.itemsize)
        out_f = _qnet_pallas_grid(obs_f, w1f, b1f, w2f, b2f, tb, nt,
                                  vmem_limit)
        return out_f.reshape(B, out_size)                # contiguous -> ~free

    # ---- Unfolded gridded fallback (B not a multiple of fold). ----
    # grid = cdiv(B, TB); Pallas clips the ragged trailing block's output
    # writeback, so no jnp.pad / out[:B] round trips are needed.
    tb, nt = _choose_tile(B, batch_tile, align)
    vmem_limit = _maybe_vmem_limit(tb, in_size, out_size, obs.dtype.itemsize)
    return _qnet_pallas_grid(obs, w1, b1, w2, b2, tb, nt, vmem_limit)


# ---------------------------------------------------------------------------
# Parameter init (matches nn.Linear semantics) and pure-JAX reference.
# ---------------------------------------------------------------------------
def init_qnet_params(key, input_size, output_size, hidden_dim):
    """Mimics nn.Linear's uniform(-1/sqrt(fan_in), 1/sqrt(fan_in)) init.
    PyTorch stores Linear weight as (out, in); we keep (in, out) so the kernel
    does x @ W without a transpose — semantics (x @ W.T + b) are identical."""
    k1, k2, k3, k4 = jax.random.split(key, 4)
    bound1 = 1.0 / jnp.sqrt(jnp.float32(input_size))
    bound2 = 1.0 / jnp.sqrt(jnp.float32(hidden_dim))
    w1 = jax.random.uniform(k1, (input_size, hidden_dim), jnp.float32, -bound1, bound1)
    b1 = jax.random.uniform(k2, (1, hidden_dim), jnp.float32, -bound1, bound1)
    w2 = jax.random.uniform(k3, (hidden_dim, output_size), jnp.float32, -bound2, bound2)
    b2 = jax.random.uniform(k4, (1, output_size), jnp.float32, -bound2, bound2)
    return w1, b1, w2, b2


def qnet_reference(obs, w1, b1, w2, b2):
    h = jnp.maximum(obs @ w1 + b1, 0.0)
    return h @ w2 + b2


if __name__ == "__main__":
    INPUT_SIZE, HIDDEN_DIM, OUTPUT_SIZE = 16, 32, 4

    key = jax.random.PRNGKey(0)
    k_obs, k_params, k_big, k_rag = jax.random.split(key, 4)
    w1, b1, w2, b2 = init_qnet_params(k_params, INPUT_SIZE, OUTPUT_SIZE, HIDDEN_DIM)

    # 1) Toy batch (B=8): single resident block, no grid.
    obs_small = jax.random.normal(k_obs, (8, INPUT_SIZE), dtype=jnp.float32)
    out_small = jax.block_until_ready(qnet_forward(obs_small, w1, b1, w2, b2))
    ref_small = qnet_reference(obs_small, w1, b1, w2, b2)
    assert out_small.shape == (8, OUTPUT_SIZE)
    assert jnp.allclose(out_small, ref_small, atol=1e-5, rtol=1e-5)

    # 2) Gridded lane-dense (8-fold) path.  batch_tile is lowered to 1024 only
    #    so the grid is exercised at test sizes; real workloads keep 8192+.
    obs_big = jax.random.normal(k_big, (4096, INPUT_SIZE), dtype=jnp.float32)
    out_big = jax.block_until_ready(
        qnet_forward(obs_big, w1, b1, w2, b2, batch_tile=1024))
    ref_big = qnet_reference(obs_big, w1, b1, w2, b2)
    assert out_big.shape == (4096, OUTPUT_SIZE)
    assert jnp.allclose(out_big, ref_big, atol=1e-4, rtol=1e-4)

    # 3) Ragged fallback path: B not a multiple of fold or of the tile ->
    #    cdiv grid + Pallas partial trailing-block clipping (no pad/slice).
    obs_rag = jax.random.normal(k_rag, (4100, INPUT_SIZE), dtype=jnp.float32)
    out_rag = jax.block_until_ready(
        qnet_forward(obs_rag, w1, b1, w2, b2, batch_tile=1024))
    ref_rag = qnet_reference(obs_rag, w1, b1, w2, b2)
    assert out_rag.shape == (4100, OUTPUT_SIZE)
    assert jnp.allclose(out_rag, ref_rag, atol=1e-4, rtol=1e-4)

    # 4) bf16 MXU path: weights recast (tiny); obs handed in as bf16 by the
    #    caller so there is no wrapper-side recast pass over the obs stream.
    out_bf16 = jax.block_until_ready(
        qnet_forward(obs_big.astype(jnp.bfloat16), w1, b1, w2, b2,
                     batch_tile=1024, use_bf16=True))
    assert jnp.allclose(out_bf16, ref_big, atol=1e-1, rtol=1e-1)

    print("KERNEL_OK")
</pallas_src>

<mosaic_0001>
module attributes {stable_mosaic.version = 11 : i64} {
  func.func @qnet_kernel(%arg0: memref<8x16xf32, #tpu.memory_space<vmem>>, %arg1: memref<16x32xf32, #tpu.memory_space<vmem>>, %arg2: memref<1x32xf32, #tpu.memory_space<vmem>>, %arg3: memref<32x4xf32, #tpu.memory_space<vmem>>, %arg4: memref<1x4xf32, #tpu.memory_space<vmem>>, %arg5: memref<8x4xf32, #tpu.memory_space<vmem>>) attributes {dimension_semantics = [], scalar_prefetch = 0 : i64, scratch_operands = 0 : i64, tpu.core_type = #tpu.core_type<tc>} {
    %c0 = arith.constant 0 : index
    %c0_0 = arith.constant 0 : index
    %0 = vector.load %arg0[%c0, %c0_0] : memref<8x16xf32, #tpu.memory_space<vmem>>, vector<8x16xf32>
    %c0_1 = arith.constant 0 : index
    %c0_2 = arith.constant 0 : index
    %1 = vector.load %arg1[%c0_1, %c0_2] : memref<16x32xf32, #tpu.memory_space<vmem>>, vector<16x32xf32>
    %cst = arith.constant dense<0.000000e+00> : vector<8x32xf32>
    %2 = tpu.matmul %0, %1, %cst {dimension_numbers = #tpu.dot_dimension_numbers<[1], [0], [0], [1], [0, 0, 1, 1], [], []>} : vector<8x16xf32>, vector<16x32xf32>, vector<8x32xf32> -> vector<8x32xf32>
    %c0_3 = arith.constant 0 : index
    %c0_4 = arith.constant 0 : index
    %3 = vector.load %arg2[%c0_3, %c0_4] : memref<1x32xf32, #tpu.memory_space<vmem>>, vector<1x32xf32>
    %4 = vector.broadcast %3 : vector<1x32xf32> to vector<8x32xf32>
    %5 = arith.addf %2, %4 : vector<8x32xf32>
    %cst_5 = arith.constant 0.000000e+00 : f32
    %6 = vector.broadcast %cst_5 : f32 to vector<8x32xf32>
    %7 = arith.maximumf %5, %6 : vector<8x32xf32>
    %c0_6 = arith.constant 0 : index
    %c0_7 = arith.constant 0 : index
    %8 = vector.load %arg3[%c0_6, %c0_7] : memref<32x4xf32, #tpu.memory_space<vmem>>, vector<32x4xf32>
    %cst_8 = arith.constant dense<0.000000e+00> : vector<8x4xf32>
    %9 = tpu.matmul %7, %8, %cst_8 {dimension_numbers = #tpu.dot_dimension_numbers<[1], [0], [0], [1], [0, 0, 1, 1], [], []>} : vector<8x32xf32>, vector<32x4xf32>, vector<8x4xf32> -> vector<8x4xf32>
    %c0_9 = arith.constant 0 : index
    %c0_10 = arith.constant 0 : index
    %10 = vector.load %arg4[%c0_9, %c0_10] : memref<1x4xf32, #tpu.memory_space<vmem>>, vector<1x4xf32>
    %11 = vector.broadcast %10 : vector<1x4xf32> to vector<8x4xf32>
    %12 = arith.addf %9, %11 : vector<8x4xf32>
    %c0_11 = arith.constant 0 : index
    %c0_12 = arith.constant 0 : index
    %13 = vector.load %arg5[%c0_11, %c0_12] : memref<8x4xf32, #tpu.memory_space<vmem>>, vector<8x4xf32>
    tpu.vector_store %arg5[%c0_11, %c0_12], %12 {strides = array<i32>} : memref<8x4xf32, #tpu.memory_space<vmem>>, vector<8x4xf32>,
    return
  }
}

</mosaic_0001>

<bundles_post_ra>
// kernel: qnet_forward.1
= control target key start
LH: loop header
LB: loop body
LE: loop exit
PB: predicated region body
PF: predicated region fallthrough
CT: control target
= control target key end

     0   :  { %v238_v0 = vmov 0.0|0.0   ;;  %vm239_vm0 = vmmov 0   ;;  %v240_v3 = vmov 0.0   ;;  %vm30_vm1 = vcmask 130048   ;;  %s301_s1 = inlined_call_operand.vmem [shape: f32[16,32], index: 1, kind: input, shape index: {}]   ;;  %s302_s3 = inlined_call_operand.vmem [shape: f32[32,4], index: 3, kind: input, shape index: {}]   ;;  %s303_s0 = inlined_call_operand.vmem [shape: f32[8,16], index: 0, kind: input, shape index: {}]   ;;  %s304_s2 = inlined_call_operand.vmem [shape: f32[1,32], index: 2, kind: input, shape index: {}]   ;;  %s305_s4 = inlined_call_operand.vmem [shape: f32[1,4], index: 4, kind: input, shape index: {}]   ;;  %s306_s5 = inlined_call_operand.vmem [shape: f32[8,4], index: 5, kind: output, shape index: {}]  }
   0x1   :  { %226 = vmatprep.subr.bf16.mxu0 %v238_v0  ;;  %v21_v1 = vld [vmem:[%s301_s1] sm:$0xff]  ;;  %v22_v2 = vld [vmem:[%s301_s1 + $0x8] sm:$0xff]  ;;  %212 = vmatprep.mubr.msk.f32.mxu0 %vm239_vm0, %v240_v3  ;;  %v107_v9 = vld [vmem:[%s302_s3 + $0x10] sm:$0xff]  ;;  %vm116_vm2 = vcmask 261120   ;;  %vm190_vm3 = vcmask 31744  }
   0x2   :  { %v227_v4 = vpack.c.bf16 %v22_v2, %v21_v1  ;;  %229 = vmatprep.subr.bf16.mxu1 %v238_v0  ;;  %v105_v5 = vld [vmem:[%s302_s3] sm:$0xff]  ;;  %v106_v6 = vld [vmem:[%s302_s3 + $0x8] sm:$0xff]  ;;  %223 = vmatprep.mubr.msk.f32.mxu1 %vm239_vm0, %v240_v3  ;;  %v108_v10 = vld [vmem:[%s302_s3 + $0x18] sm:$0xff] }
   0x3   :  { %v230_v7 = vpack.c.bf16 %v106_v6, %v105_v5  ;;  %v20_v8 = vld [vmem:[%s303_s0] sm:$0xff]  ;;  %v233_v11 = vpack.c.bf16 %v108_v10, %v107_v9 }
   0x4   :  { %228 = vmatpush3.bf16.msra.mxu0 %v227_v4  ;;  %v196_v12 = vld [vmem:[%s304_s2] ss:$0 sm:$0xff] }
   0x5   :  { %231 = vmatpush3.bf16.msra.mxu1 %v230_v7  ;;  %v198_v17 = vld [vmem:[%s305_s4] ss:$0 sm:$0xff] }
   0x6   :  { %232 = vmatprep.subr.bf16.mxu1 %v238_v0 }
   0x7   :  { %213 = vmatmul.mubr.msk.f32.vlgmr.msra.gmra.mrb[0].mxu0 %vm30_vm1, %v20_v8 }
   0x9   :  { %234 = vmatpush3.bf16.msra.mxu1 %v233_v11 }
  0xda   :  { %v100_v13 = vpop.f32.mrb[0].mxu0 }
  0xdb   :  { %v101_v14 = vadd.f32 %v196_v12, %v100_v13  ;;  %v214_v15 = vpop.f32.mrb[1].mxu0 }
  0xdd   :  { %v104_v16 = vmax.f32 %v101_v14, 0.0 }
  0xdf   :  { %224 = vmatmul.mubr.msk.f32.vlgmr.msra.gmra.mrb[0].mxu1 %vm116_vm2, %v104_v16 }
 0x1b2   :  { %v186_v18 = vpop.f32.mrb[0].mxu1 }
 0x1b3   :  { %v187_v19 = vadd.f32 %v198_v17, %v186_v18  ;;  %v225_v20 = vpop.f32.mrb[1].mxu1 }
 0x1b5   :  { %191 = vst.msk [vmem:[%s306_s5] sm:$0xff] %vm190_vm3, %v187_v19 }

</bundles_post_ra>
